<compile_context>
chip_gen: v7x
topology: tpu7x:2x2x1
jax: 0.10.0
libtpu: 0.0.40
codegen_flags: <defaults>
</compile_context>

<pallas_src>
import functools

import jax
import jax.numpy as jnp
import numpy as np
from jax.experimental import pallas as pl
from jax.experimental.pallas import tpu as pltpu

BN_EPS = 1e-5


def _round_up(a, b):
    return (a + b - 1) // b * b


def _conv_stats_kernel(x_ref, w_ref, mask_ref, conv_ref, sum_ref, sq_ref,
                       *, K, W, Cout, Lout_pad):
    """Pass 1: fused shifted-matmul conv + batch-stat accumulation.

    x_ref:    (1, Cin, Lin_pad)   zero-padded flattened NCHW image (one per grid step)
    w_ref:    (K*K, Cout, Cin)    per-tap weight slabs
    mask_ref: (1, Lout_pad)       1.0 where a flattened column is a valid output pixel
    conv_ref: (1, Cout, Lout_pad) raw conv result (lane-dense)
    sum_ref:  (Cout, 1)           running per-channel sum   (resident across grid)
    sq_ref:   (Cout, 1)           running per-channel sumsq (resident across grid)
    """
    acc = jnp.zeros((Cout, Lout_pad), jnp.float32)
    for s in range(K * K):                      # static unroll over the 3x3 taps
        ki, kj = divmod(s, K)
        off = ki * W + kj                       # shift in the flattened (H*W) axis
        xs = x_ref[0, :, off:off + Lout_pad]    # (Cin, Lout_pad), static slice
        acc = acc + jnp.dot(w_ref[s], xs, preferred_element_type=jnp.float32)
    conv_ref[0] = acc                           # lane-dense (Cout, Lout_pad) store

    # Single-pass batch stats over valid output pixels only (mask kills the
    # row-wrap / padding columns).  var is reconstructed as E[x^2] - mean^2 in pass 2.
    masked = acc * mask_ref[...]

    @pl.when(pl.program_id(0) == 0)
    def _():
        sum_ref[...] = jnp.zeros_like(sum_ref)
        sq_ref[...] = jnp.zeros_like(sq_ref)

    sum_ref[...] += jnp.sum(masked, axis=-1, keepdims=True)
    sq_ref[...] += jnp.sum(masked * acc, axis=-1, keepdims=True)


def _bn_relu_kernel(conv_ref, sum_ref, sq_ref, gamma_ref, beta_ref, o_ref,
                    *, count, eps):
    """Pass 2: BN fold (Cout scalars, VPU/EUP — free filler) + FMA + ReLU, lane-dense."""
    inv_n = 1.0 / count
    mean = sum_ref[...] * inv_n                                     # (Cout, 1)
    var = jnp.maximum(sq_ref[...] * inv_n - mean * mean, 0.0)       # clamp E[x^2]-m^2
    inv_std = jax.lax.rsqrt(var + eps)
    scale = gamma_ref[...] * inv_std                                # (Cout, 1)
    bias = beta_ref[...] - mean * scale                             # (Cout, 1)
    o_ref[0] = jnp.maximum(conv_ref[0] * scale + bias, 0.0)


@jax.jit
def bcnn_forward(x, weight, gamma, beta):
    """x: (N, Cin, H, W) f32; weight: (Cout, Cin, K, K); gamma/beta: (Cout,)."""
    N, Cin, H, W = x.shape
    Cout, _, K, _ = weight.shape
    Ho, Wo = H - K + 1, W - K + 1               # stride=1, padding=0, dilation=1

    # Flattened-spatial formulation: output column p = ho*W + wo (wo < Wo valid).
    Lout = Ho * W
    Lout_pad = _round_up(Lout, 128)             # lane-dense output width
    Lin_pad = _round_up(Lout_pad + (K - 1) * (W + 1), 128)

    # ---- glue (cheap, fused under jit): flatten H,W + small zero pad ----
    x_flat = x.reshape(N, Cin, H * W).astype(jnp.float32)
    x_flat = jnp.pad(x_flat, ((0, 0), (0, 0), (0, Lin_pad - H * W)))

    # Per-tap weight slabs: w[s=ki*K+kj, co, ci] = weight[co, ci, ki, kj]
    w = jnp.transpose(weight, (2, 3, 0, 1)).reshape(K * K, Cout, Cin)
    w = w.astype(jnp.float32)

    # Validity mask for flattened output columns (constant, built at trace time).
    p = np.arange(Lout_pad)
    mask = ((p < Lout) & (p % W < Wo)).astype(np.float32).reshape(1, Lout_pad)
    mask = jnp.asarray(mask)

    gamma2d = gamma.astype(jnp.float32).reshape(Cout, 1)
    beta2d = beta.astype(jnp.float32).reshape(Cout, 1)

    # ---- pass 1: conv + batch stats (grid over batch, stats resident) ----
    kern1 = functools.partial(_conv_stats_kernel,
                              K=K, W=W, Cout=Cout, Lout_pad=Lout_pad)
    conv, csum, csq = pl.pallas_call(
        kern1,
        grid=(N,),
        out_shape=(
            jax.ShapeDtypeStruct((N, Cout, Lout_pad), jnp.float32),
            jax.ShapeDtypeStruct((Cout, 1), jnp.float32),
            jax.ShapeDtypeStruct((Cout, 1), jnp.float32),
        ),
        in_specs=[
            pl.BlockSpec((1, Cin, Lin_pad), lambda n: (n, 0, 0)),
            pl.BlockSpec((K * K, Cout, Cin), lambda n: (0, 0, 0)),
            pl.BlockSpec((1, Lout_pad), lambda n: (0, 0)),
        ],
        out_specs=(
            pl.BlockSpec((1, Cout, Lout_pad), lambda n: (n, 0, 0)),
            pl.BlockSpec((Cout, 1), lambda n: (0, 0)),
            pl.BlockSpec((Cout, 1), lambda n: (0, 0)),
        ),
        compiler_params=pltpu.CompilerParams(
            dimension_semantics=("arbitrary",)),
    )(x_flat, w, mask)

    # ---- pass 2: BN fold + normalize + ReLU (in-place on the conv buffer) ----
    count = float(N * Ho * Wo)
    kern2 = functools.partial(_bn_relu_kernel, count=count, eps=BN_EPS)
    out_flat = pl.pallas_call(
        kern2,
        grid=(N,),
        out_shape=jax.ShapeDtypeStruct((N, Cout, Lout_pad), jnp.float32),
        in_specs=[
            pl.BlockSpec((1, Cout, Lout_pad), lambda n: (n, 0, 0)),
            pl.BlockSpec((Cout, 1), lambda n: (0, 0)),
            pl.BlockSpec((Cout, 1), lambda n: (0, 0)),
            pl.BlockSpec((Cout, 1), lambda n: (0, 0)),
            pl.BlockSpec((Cout, 1), lambda n: (0, 0)),
        ],
        out_specs=pl.BlockSpec((1, Cout, Lout_pad), lambda n: (n, 0, 0)),
        input_output_aliases={0: 0},            # write normalized result in place
        compiler_params=pltpu.CompilerParams(
            dimension_semantics=("parallel",)),
    )(conv, csum, csq, gamma2d, beta2d)

    # ---- glue: drop wrap/pad columns and restore NCHW ----
    out = out_flat[:, :, :Lout].reshape(N, Cout, Ho, W)[:, :, :, :Wo]
    return out


def _reference(x, weight, gamma, beta):
    """Pure-JAX reference (conv -> train-mode BN -> ReLU)."""
    conv = jax.lax.conv_general_dilated(
        x, weight, window_strides=(1, 1), padding="VALID",
        dimension_numbers=("NCHW", "OIHW", "NCHW"),
    )
    mean = jnp.mean(conv, axis=(0, 2, 3), keepdims=True)
    var = jnp.mean((conv - mean) ** 2, axis=(0, 2, 3), keepdims=True)
    y = (conv - mean) * jax.lax.rsqrt(var + BN_EPS)
    y = y * gamma.reshape(1, -1, 1, 1) + beta.reshape(1, -1, 1, 1)
    return jnp.maximum(y, 0.0)


if __name__ == "__main__":
    # Bcnn(in_channels=4, out_channels=8, kernel_size=3, stride=1, padding=0, bias=False)
    N, Cin, H, W = 2, 4, 16, 16
    Cout, K = 8, 3

    key = jax.random.PRNGKey(0)
    k_x, k_w = jax.random.split(key)
    x = jax.random.normal(k_x, (N, Cin, H, W), dtype=jnp.float32)

    # Kaiming-uniform-like conv weight init (as in nn.Conv2d).
    fan_in = Cin * K * K
    bound = float(np.sqrt(1.0 / fan_in))
    weight = jax.random.uniform(k_w, (Cout, Cin, K, K),
                                minval=-bound, maxval=bound, dtype=jnp.float32)

    # BatchNorm2d default init: gamma = 1, beta = 0.
    gamma = jnp.ones((Cout,), dtype=jnp.float32)
    beta = jnp.zeros((Cout,), dtype=jnp.float32)

    out = jax.block_until_ready(bcnn_forward(x, weight, gamma, beta))
    ref = jax.block_until_ready(_reference(x, weight, gamma, beta))

    assert out.shape == (N, Cout, H - K + 1, W - K + 1)
    np.testing.assert_allclose(np.asarray(out), np.asarray(ref),
                               atol=2e-3, rtol=2e-3)

    print("KERNEL_OK")
</pallas_src>

<mosaic_0001>
module attributes {stable_mosaic.version = 11 : i64} {
  func.func @_conv_stats_kernel(%arg0: i32, %arg1: memref<1x4x384xf32, #tpu.memory_space<vmem>>, %arg2: memref<9x8x4xf32, #tpu.memory_space<vmem>>, %arg3: memref<1x256xf32, #tpu.memory_space<vmem>>, %arg4: memref<1x8x256xf32, #tpu.memory_space<vmem>>, %arg5: memref<8x1xf32, #tpu.memory_space<vmem>>, %arg6: memref<8x1xf32, #tpu.memory_space<vmem>>) attributes {dimension_semantics = [#tpu.dimension_semantics<arbitrary>], iteration_bounds = array<i64: 2>, scalar_prefetch = 0 : i64, scratch_operands = 0 : i64, tpu.core_type = #tpu.core_type<tc>, window_params = [{transform_indices = @transform_0, window_bounds = array<i64: 1, 4, 384>}, {pipeline_mode = #tpu.pipeline_mode<synchronous>, transform_indices = @transform_1, window_bounds = array<i64: 9, 8, 4>}, {pipeline_mode = #tpu.pipeline_mode<synchronous>, transform_indices = @transform_2, window_bounds = array<i64: 1, 256>}, {transform_indices = @transform_3, window_bounds = array<i64: 1, 8, 256>}, {pipeline_mode = #tpu.pipeline_mode<synchronous>, transform_indices = @transform_4, window_bounds = array<i64: 8, 1>}, {pipeline_mode = #tpu.pipeline_mode<synchronous>, transform_indices = @transform_5, window_bounds = array<i64: 8, 1>}]} {
    %cst = arith.constant 0.000000e+00 : f32
    %0 = vector.broadcast %cst : f32 to vector<8x256xf32>
    %c0 = arith.constant 0 : index
    %c0_0 = arith.constant 0 : index
    %c0_1 = arith.constant 0 : index
    %1 = vector.load %arg1[%c0, %c0_0, %c0_1] : memref<1x4x384xf32, #tpu.memory_space<vmem>>, vector<1x4x256xf32>
    %2 = vector.shape_cast %1 : vector<1x4x256xf32> to vector<4x256xf32>
    %c0_2 = arith.constant 0 : index
    %c0_3 = arith.constant 0 : index
    %c0_4 = arith.constant 0 : index
    %3 = vector.load %arg2[%c0_2, %c0_3, %c0_4] : memref<9x8x4xf32, #tpu.memory_space<vmem>>, vector<1x8x4xf32>
    %4 = vector.shape_cast %3 : vector<1x8x4xf32> to vector<8x4xf32>
    %cst_5 = arith.constant dense<0.000000e+00> : vector<8x256xf32>
    %5 = tpu.matmul %4, %2, %cst_5 {dimension_numbers = #tpu.dot_dimension_numbers<[1], [0], [0], [1], [0, 0, 1, 1], [], []>} : vector<8x4xf32>, vector<4x256xf32>, vector<8x256xf32> -> vector<8x256xf32>
    %6 = arith.addf %0, %5 : vector<8x256xf32>
    %c0_6 = arith.constant 0 : index
    %c0_7 = arith.constant 0 : index
    %c1 = arith.constant 1 : index
    %7 = vector.load %arg1[%c0_6, %c0_7, %c1] : memref<1x4x384xf32, #tpu.memory_space<vmem>>, vector<1x4x256xf32>
    %8 = vector.shape_cast %7 : vector<1x4x256xf32> to vector<4x256xf32>
    %c1_8 = arith.constant 1 : index
    %c0_9 = arith.constant 0 : index
    %c0_10 = arith.constant 0 : index
    %9 = vector.load %arg2[%c1_8, %c0_9, %c0_10] : memref<9x8x4xf32, #tpu.memory_space<vmem>>, vector<1x8x4xf32>
    %10 = vector.shape_cast %9 : vector<1x8x4xf32> to vector<8x4xf32>
    %cst_11 = arith.constant dense<0.000000e+00> : vector<8x256xf32>
    %11 = tpu.matmul %10, %8, %cst_11 {dimension_numbers = #tpu.dot_dimension_numbers<[1], [0], [0], [1], [0, 0, 1, 1], [], []>} : vector<8x4xf32>, vector<4x256xf32>, vector<8x256xf32> -> vector<8x256xf32>
    %12 = arith.addf %6, %11 : vector<8x256xf32>
    %c0_12 = arith.constant 0 : index
    %c0_13 = arith.constant 0 : index
    %c2 = arith.constant 2 : index
    %13 = vector.load %arg1[%c0_12, %c0_13, %c2] : memref<1x4x384xf32, #tpu.memory_space<vmem>>, vector<1x4x256xf32>
    %14 = vector.shape_cast %13 : vector<1x4x256xf32> to vector<4x256xf32>
    %c2_14 = arith.constant 2 : index
    %c0_15 = arith.constant 0 : index
    %c0_16 = arith.constant 0 : index
    %15 = vector.load %arg2[%c2_14, %c0_15, %c0_16] : memref<9x8x4xf32, #tpu.memory_space<vmem>>, vector<1x8x4xf32>
    %16 = vector.shape_cast %15 : vector<1x8x4xf32> to vector<8x4xf32>
    %cst_17 = arith.constant dense<0.000000e+00> : vector<8x256xf32>
    %17 = tpu.matmul %16, %14, %cst_17 {dimension_numbers = #tpu.dot_dimension_numbers<[1], [0], [0], [1], [0, 0, 1, 1], [], []>} : vector<8x4xf32>, vector<4x256xf32>, vector<8x256xf32> -> vector<8x256xf32>
    %18 = arith.addf %12, %17 : vector<8x256xf32>
    %c0_18 = arith.constant 0 : index
    %c0_19 = arith.constant 0 : index
    %c16 = arith.constant 16 : index
    %19 = vector.load %arg1[%c0_18, %c0_19, %c16] : memref<1x4x384xf32, #tpu.memory_space<vmem>>, vector<1x4x256xf32>
    %20 = vector.shape_cast %19 : vector<1x4x256xf32> to vector<4x256xf32>
    %c3 = arith.constant 3 : index
    %c0_20 = arith.constant 0 : index
    %c0_21 = arith.constant 0 : index
    %21 = vector.load %arg2[%c3, %c0_20, %c0_21] : memref<9x8x4xf32, #tpu.memory_space<vmem>>, vector<1x8x4xf32>
    %22 = vector.shape_cast %21 : vector<1x8x4xf32> to vector<8x4xf32>
    %cst_22 = arith.constant dense<0.000000e+00> : vector<8x256xf32>
    %23 = tpu.matmul %22, %20, %cst_22 {dimension_numbers = #tpu.dot_dimension_numbers<[1], [0], [0], [1], [0, 0, 1, 1], [], []>} : vector<8x4xf32>, vector<4x256xf32>, vector<8x256xf32> -> vector<8x256xf32>
    %24 = arith.addf %18, %23 : vector<8x256xf32>
    %c0_23 = arith.constant 0 : index
    %c0_24 = arith.constant 0 : index
    %c17 = arith.constant 17 : index
    %25 = vector.load %arg1[%c0_23, %c0_24, %c17] : memref<1x4x384xf32, #tpu.memory_space<vmem>>, vector<1x4x256xf32>
    %26 = vector.shape_cast %25 : vector<1x4x256xf32> to vector<4x256xf32>
    %c4 = arith.constant 4 : index
    %c0_25 = arith.constant 0 : index
    %c0_26 = arith.constant 0 : index
    %27 = vector.load %arg2[%c4, %c0_25, %c0_26] : memref<9x8x4xf32, #tpu.memory_space<vmem>>, vector<1x8x4xf32>
    %28 = vector.shape_cast %27 : vector<1x8x4xf32> to vector<8x4xf32>
    %cst_27 = arith.constant dense<0.000000e+00> : vector<8x256xf32>
    %29 = tpu.matmul %28, %26, %cst_27 {dimension_numbers = #tpu.dot_dimension_numbers<[1], [0], [0], [1], [0, 0, 1, 1], [], []>} : vector<8x4xf32>, vector<4x256xf32>, vector<8x256xf32> -> vector<8x256xf32>
    %30 = arith.addf %24, %29 : vector<8x256xf32>
    %c0_28 = arith.constant 0 : index
    %c0_29 = arith.constant 0 : index
    %c18 = arith.constant 18 : index
    %31 = vector.load %arg1[%c0_28, %c0_29, %c18] : memref<1x4x384xf32, #tpu.memory_space<vmem>>, vector<1x4x256xf32>
    %32 = vector.shape_cast %31 : vector<1x4x256xf32> to vector<4x256xf32>
    %c5 = arith.constant 5 : index
    %c0_30 = arith.constant 0 : index
    %c0_31 = arith.constant 0 : index
    %33 = vector.load %arg2[%c5, %c0_30, %c0_31] : memref<9x8x4xf32, #tpu.memory_space<vmem>>, vector<1x8x4xf32>
    %34 = vector.shape_cast %33 : vector<1x8x4xf32> to vector<8x4xf32>
    %cst_32 = arith.constant dense<0.000000e+00> : vector<8x256xf32>
    %35 = tpu.matmul %34, %32, %cst_32 {dimension_numbers = #tpu.dot_dimension_numbers<[1], [0], [0], [1], [0, 0, 1, 1], [], []>} : vector<8x4xf32>, vector<4x256xf32>, vector<8x256xf32> -> vector<8x256xf32>
    %36 = arith.addf %30, %35 : vector<8x256xf32>
    %c0_33 = arith.constant 0 : index
    %c0_34 = arith.constant 0 : index
    %c32 = arith.constant 32 : index
    %37 = vector.load %arg1[%c0_33, %c0_34, %c32] : memref<1x4x384xf32, #tpu.memory_space<vmem>>, vector<1x4x256xf32>
    %38 = vector.shape_cast %37 : vector<1x4x256xf32> to vector<4x256xf32>
    %c6 = arith.constant 6 : index
    %c0_35 = arith.constant 0 : index
    %c0_36 = arith.constant 0 : index
    %39 = vector.load %arg2[%c6, %c0_35, %c0_36] : memref<9x8x4xf32, #tpu.memory_space<vmem>>, vector<1x8x4xf32>
    %40 = vector.shape_cast %39 : vector<1x8x4xf32> to vector<8x4xf32>
    %cst_37 = arith.constant dense<0.000000e+00> : vector<8x256xf32>
    %41 = tpu.matmul %40, %38, %cst_37 {dimension_numbers = #tpu.dot_dimension_numbers<[1], [0], [0], [1], [0, 0, 1, 1], [], []>} : vector<8x4xf32>, vector<4x256xf32>, vector<8x256xf32> -> vector<8x256xf32>
    %42 = arith.addf %36, %41 : vector<8x256xf32>
    %c0_38 = arith.constant 0 : index
    %c0_39 = arith.constant 0 : index
    %c33 = arith.constant 33 : index
    %43 = vector.load %arg1[%c0_38, %c0_39, %c33] : memref<1x4x384xf32, #tpu.memory_space<vmem>>, vector<1x4x256xf32>
    %44 = vector.shape_cast %43 : vector<1x4x256xf32> to vector<4x256xf32>
    %c7 = arith.constant 7 : index
    %c0_40 = arith.constant 0 : index
    %c0_41 = arith.constant 0 : index
    %45 = vector.load %arg2[%c7, %c0_40, %c0_41] : memref<9x8x4xf32, #tpu.memory_space<vmem>>, vector<1x8x4xf32>
    %46 = vector.shape_cast %45 : vector<1x8x4xf32> to vector<8x4xf32>
    %cst_42 = arith.constant dense<0.000000e+00> : vector<8x256xf32>
    %47 = tpu.matmul %46, %44, %cst_42 {dimension_numbers = #tpu.dot_dimension_numbers<[1], [0], [0], [1], [0, 0, 1, 1], [], []>} : vector<8x4xf32>, vector<4x256xf32>, vector<8x256xf32> -> vector<8x256xf32>
    %48 = arith.addf %42, %47 : vector<8x256xf32>
    %c0_43 = arith.constant 0 : index
    %c0_44 = arith.constant 0 : index
    %c34 = arith.constant 34 : index
    %49 = vector.load %arg1[%c0_43, %c0_44, %c34] : memref<1x4x384xf32, #tpu.memory_space<vmem>>, vector<1x4x256xf32>
    %50 = vector.shape_cast %49 : vector<1x4x256xf32> to vector<4x256xf32>
    %c8 = arith.constant 8 : index
    %c0_45 = arith.constant 0 : index
    %c0_46 = arith.constant 0 : index
    %51 = vector.load %arg2[%c8, %c0_45, %c0_46] : memref<9x8x4xf32, #tpu.memory_space<vmem>>, vector<1x8x4xf32>
    %52 = vector.shape_cast %51 : vector<1x8x4xf32> to vector<8x4xf32>
    %cst_47 = arith.constant dense<0.000000e+00> : vector<8x256xf32>
    %53 = tpu.matmul %52, %50, %cst_47 {dimension_numbers = #tpu.dot_dimension_numbers<[1], [0], [0], [1], [0, 0, 1, 1], [], []>} : vector<8x4xf32>, vector<4x256xf32>, vector<8x256xf32> -> vector<8x256xf32>
    %54 = arith.addf %48, %53 : vector<8x256xf32>
    %c0_48 = arith.constant 0 : index
    %c0_49 = arith.constant 0 : index
    %c0_50 = arith.constant 0 : index
    %55 = vector.load %arg4[%c0_48, %c0_49, %c0_50] : memref<1x8x256xf32, #tpu.memory_space<vmem>>, vector<1x8x256xf32>
    %56 = vector.shape_cast %55 : vector<1x8x256xf32> to vector<8x256xf32>
    %57 = vector.shape_cast %54 : vector<8x256xf32> to vector<1x8x256xf32>
    tpu.vector_store %arg4[%c0_48, %c0_49, %c0_50], %57 {strides = array<i32>} : memref<1x8x256xf32, #tpu.memory_space<vmem>>, vector<1x8x256xf32>,
    %c0_51 = arith.constant 0 : index
    %c0_52 = arith.constant 0 : index
    %58 = vector.load %arg3[%c0_51, %c0_52] : memref<1x256xf32, #tpu.memory_space<vmem>>, vector<1x256xf32>
    %59 = vector.broadcast %58 : vector<1x256xf32> to vector<8x256xf32>
    %60 = arith.mulf %54, %59 : vector<8x256xf32>
    %c0_i32 = arith.constant 0 : i32
    %61 = arith.cmpi eq, %arg0, %c0_i32 : i32
    %62 = arith.extui %61 : i1 to i32
    %c0_i32_53 = arith.constant 0 : i32
    %63 = arith.cmpi ne, %62, %c0_i32_53 : i32
    scf.if %63 {
      %cst_64 = arith.constant 0.000000e+00 : f32
      %75 = vector.broadcast %cst_64 : f32 to vector<8x1xf32>
      %c0_65 = arith.constant 0 : index
      %c0_66 = arith.constant 0 : index
      %76 = vector.load %arg5[%c0_65, %c0_66] : memref<8x1xf32, #tpu.memory_space<vmem>>, vector<8x1xf32>
      tpu.vector_store %arg5[%c0_65, %c0_66], %75 {strides = array<i32>} : memref<8x1xf32, #tpu.memory_space<vmem>>, vector<8x1xf32>,
      %cst_67 = arith.constant 0.000000e+00 : f32
      %77 = vector.broadcast %cst_67 : f32 to vector<8x1xf32>
      %c0_68 = arith.constant 0 : index
      %c0_69 = arith.constant 0 : index
      %78 = vector.load %arg6[%c0_68, %c0_69] : memref<8x1xf32, #tpu.memory_space<vmem>>, vector<8x1xf32>
      tpu.vector_store %arg6[%c0_68, %c0_69], %77 {strides = array<i32>} : memref<8x1xf32, #tpu.memory_space<vmem>>, vector<8x1xf32>,
    } else {
    }
    %c0_54 = arith.constant 0 : index
    %c0_55 = arith.constant 0 : index
    %64 = vector.load %arg5[%c0_54, %c0_55] : memref<8x1xf32, #tpu.memory_space<vmem>>, vector<8x1xf32>
    %cst_56 = arith.constant dense<0.000000e+00> : vector<8xf32>
    %65 = vector.multi_reduction <add>, %60, %cst_56 [1] : vector<8x256xf32> to vector<8xf32>
    %66 = vector.shape_cast %65 : vector<8xf32> to vector<8x1xf32>
    %67 = arith.addf %64, %66 : vector<8x1xf32>
    %c0_57 = arith.constant 0 : index
    %c0_58 = arith.constant 0 : index
    %68 = vector.load %arg5[%c0_57, %c0_58] : memref<8x1xf32, #tpu.memory_space<vmem>>, vector<8x1xf32>
    tpu.vector_store %arg5[%c0_57, %c0_58], %67 {strides = array<i32>} : memref<8x1xf32, #tpu.memory_space<vmem>>, vector<8x1xf32>,
    %c0_59 = arith.constant 0 : index
    %c0_60 = arith.constant 0 : index
    %69 = vector.load %arg6[%c0_59, %c0_60] : memref<8x1xf32, #tpu.memory_space<vmem>>, vector<8x1xf32>
    %70 = arith.mulf %60, %54 : vector<8x256xf32>
    %cst_61 = arith.constant dense<0.000000e+00> : vector<8xf32>
    %71 = vector.multi_reduction <add>, %70, %cst_61 [1] : vector<8x256xf32> to vector<8xf32>
    %72 = vector.shape_cast %71 : vector<8xf32> to vector<8x1xf32>
    %73 = arith.addf %69, %72 : vector<8x1xf32>
    %c0_62 = arith.constant 0 : index
    %c0_63 = arith.constant 0 : index
    %74 = vector.load %arg6[%c0_62, %c0_63] : memref<8x1xf32, #tpu.memory_space<vmem>>, vector<8x1xf32>
    tpu.vector_store %arg6[%c0_62, %c0_63], %73 {strides = array<i32>} : memref<8x1xf32, #tpu.memory_space<vmem>>, vector<8x1xf32>,
    return
  }
  func.func @transform_0(%arg0: i32) -> (i32, i32, i32) {
    %c0_i32 = arith.constant 0 : i32
    %c0_i32_0 = arith.constant 0 : i32
    %c0_i32_1 = arith.constant 0 : i32
    return %arg0, %c0_i32, %c0_i32_0 : i32, i32, i32
  }
  func.func @transform_1(%arg0: i32) -> (i32, i32, i32) {
    %c0_i32 = arith.constant 0 : i32
    %c0_i32_0 = arith.constant 0 : i32
    %c0_i32_1 = arith.constant 0 : i32
    %c0_i32_2 = arith.constant 0 : i32
    return %c0_i32, %c0_i32_0, %c0_i32_1 : i32, i32, i32
  }
  func.func @transform_2(%arg0: i32) -> (i32, i32) {
    %c0_i32 = arith.constant 0 : i32
    %c0_i32_0 = arith.constant 0 : i32
    %c0_i32_1 = arith.constant 0 : i32
    return %c0_i32, %c0_i32_0 : i32, i32
  }
  func.func @transform_3(%arg0: i32) -> (i32, i32, i32) {
    %c0_i32 = arith.constant 0 : i32
    %c0_i32_0 = arith.constant 0 : i32
    %c0_i32_1 = arith.constant 0 : i32
    return %arg0, %c0_i32, %c0_i32_0 : i32, i32, i32
  }
  func.func @transform_4(%arg0: i32) -> (i32, i32) {
    %c0_i32 = arith.constant 0 : i32
    %c0_i32_0 = arith.constant 0 : i32
    %c0_i32_1 = arith.constant 0 : i32
    return %c0_i32, %c0_i32_0 : i32, i32
  }
  func.func @transform_5(%arg0: i32) -> (i32, i32) {
    %c0_i32 = arith.constant 0 : i32
    %c0_i32_0 = arith.constant 0 : i32
    %c0_i32_1 = arith.constant 0 : i32
    return %c0_i32, %c0_i32_0 : i32, i32
  }
}

module attributes {stable_mosaic.version = 11 : i64} {
  func.func @_bn_relu_kernel(%arg0: i32, %arg1: memref<1x8x256xf32, #tpu.memory_space<vmem>>, %arg2: memref<8x1xf32, #tpu.memory_space<vmem>>, %arg3: memref<8x1xf32, #tpu.memory_space<vmem>>, %arg4: memref<8x1xf32, #tpu.memory_space<vmem>>, %arg5: memref<8x1xf32, #tpu.memory_space<vmem>>, %arg6: memref<1x8x256xf32, #tpu.memory_space<vmem>>) attributes {dimension_semantics = [#tpu.dimension_semantics<parallel>], iteration_bounds = array<i64: 2>, scalar_prefetch = 0 : i64, scratch_operands = 0 : i64, tpu.core_type = #tpu.core_type<tc>, window_params = [{transform_indices = @transform_0, window_bounds = array<i64: 1, 8, 256>}, {pipeline_mode = #tpu.pipeline_mode<synchronous>, transform_indices = @transform_1, window_bounds = array<i64: 8, 1>}, {pipeline_mode = #tpu.pipeline_mode<synchronous>, transform_indices = @transform_2, window_bounds = array<i64: 8, 1>}, {pipeline_mode = #tpu.pipeline_mode<synchronous>, transform_indices = @transform_3, window_bounds = array<i64: 8, 1>}, {pipeline_mode = #tpu.pipeline_mode<synchronous>, transform_indices = @transform_4, window_bounds = array<i64: 8, 1>}, {transform_indices = @transform_5, window_bounds = array<i64: 1, 8, 256>}]} {
    %c0 = arith.constant 0 : index
    %c0_0 = arith.constant 0 : index
    %0 = vector.load %arg2[%c0, %c0_0] : memref<8x1xf32, #tpu.memory_space<vmem>>, vector<8x1xf32>
    %cst = arith.constant 0.00255102036 : f32
    %1 = vector.broadcast %cst : f32 to vector<8x1xf32>
    %2 = arith.mulf %0, %1 : vector<8x1xf32>
    %c0_1 = arith.constant 0 : index
    %c0_2 = arith.constant 0 : index
    %3 = vector.load %arg3[%c0_1, %c0_2] : memref<8x1xf32, #tpu.memory_space<vmem>>, vector<8x1xf32>
    %cst_3 = arith.constant 0.00255102036 : f32
    %4 = vector.broadcast %cst_3 : f32 to vector<8x1xf32>
    %5 = arith.mulf %3, %4 : vector<8x1xf32>
    %6 = arith.mulf %2, %2 : vector<8x1xf32>
    %7 = arith.subf %5, %6 : vector<8x1xf32>
    %cst_4 = arith.constant 0.000000e+00 : f32
    %8 = vector.broadcast %cst_4 : f32 to vector<8x1xf32>
    %9 = arith.maximumf %7, %8 : vector<8x1xf32>
    %cst_5 = arith.constant 9.99999974E-6 : f32
    %10 = vector.broadcast %cst_5 : f32 to vector<8x1xf32>
    %11 = arith.addf %9, %10 : vector<8x1xf32>
    %12 = math.rsqrt %11 : vector<8x1xf32>
    %c0_6 = arith.constant 0 : index
    %c0_7 = arith.constant 0 : index
    %13 = vector.load %arg4[%c0_6, %c0_7] : memref<8x1xf32, #tpu.memory_space<vmem>>, vector<8x1xf32>
    %14 = arith.mulf %13, %12 : vector<8x1xf32>
    %c0_8 = arith.constant 0 : index
    %c0_9 = arith.constant 0 : index
    %15 = vector.load %arg5[%c0_8, %c0_9] : memref<8x1xf32, #tpu.memory_space<vmem>>, vector<8x1xf32>
    %16 = arith.mulf %2, %14 : vector<8x1xf32>
    %17 = arith.subf %15, %16 : vector<8x1xf32>
    %c0_10 = arith.constant 0 : index
    %c0_11 = arith.constant 0 : index
    %c0_12 = arith.constant 0 : index
    %18 = vector.load %arg1[%c0_10, %c0_11, %c0_12] : memref<1x8x256xf32, #tpu.memory_space<vmem>>, vector<1x8x256xf32>
    %19 = vector.shape_cast %18 : vector<1x8x256xf32> to vector<8x256xf32>
    %20 = vector.broadcast %14 : vector<8x1xf32> to vector<8x256xf32>
    %21 = arith.mulf %19, %20 : vector<8x256xf32>
    %22 = vector.broadcast %17 : vector<8x1xf32> to vector<8x256xf32>
    %23 = arith.addf %21, %22 : vector<8x256xf32>
    %cst_13 = arith.constant 0.000000e+00 : f32
    %24 = vector.broadcast %cst_13 : f32 to vector<8x256xf32>
    %25 = arith.maximumf %23, %24 : vector<8x256xf32>
    %c0_14 = arith.constant 0 : index
    %c0_15 = arith.constant 0 : index
    %c0_16 = arith.constant 0 : index
    %26 = vector.load %arg6[%c0_14, %c0_15, %c0_16] : memref<1x8x256xf32, #tpu.memory_space<vmem>>, vector<1x8x256xf32>
    %27 = vector.shape_cast %26 : vector<1x8x256xf32> to vector<8x256xf32>
    %28 = vector.shape_cast %25 : vector<8x256xf32> to vector<1x8x256xf32>
    tpu.vector_store %arg6[%c0_14, %c0_15, %c0_16], %28 {strides = array<i32>} : memref<1x8x256xf32, #tpu.memory_space<vmem>>, vector<1x8x256xf32>,
    return
  }
  func.func @transform_0(%arg0: i32) -> (i32, i32, i32) {
    %c0_i32 = arith.constant 0 : i32
    %c0_i32_0 = arith.constant 0 : i32
    %c0_i32_1 = arith.constant 0 : i32
    return %arg0, %c0_i32, %c0_i32_0 : i32, i32, i32
  }
  func.func @transform_1(%arg0: i32) -> (i32, i32) {
    %c0_i32 = arith.constant 0 : i32
    %c0_i32_0 = arith.constant 0 : i32
    %c0_i32_1 = arith.constant 0 : i32
    return %c0_i32, %c0_i32_0 : i32, i32
  }
  func.func @transform_2(%arg0: i32) -> (i32, i32) {
    %c0_i32 = arith.constant 0 : i32
    %c0_i32_0 = arith.constant 0 : i32
    %c0_i32_1 = arith.constant 0 : i32
    return %c0_i32, %c0_i32_0 : i32, i32
  }
  func.func @transform_3(%arg0: i32) -> (i32, i32) {
    %c0_i32 = arith.constant 0 : i32
    %c0_i32_0 = arith.constant 0 : i32
    %c0_i32_1 = arith.constant 0 : i32
    return %c0_i32, %c0_i32_0 : i32, i32
  }
  func.func @transform_4(%arg0: i32) -> (i32, i32) {
    %c0_i32 = arith.constant 0 : i32
    %c0_i32_0 = arith.constant 0 : i32
    %c0_i32_1 = arith.constant 0 : i32
    return %c0_i32, %c0_i32_0 : i32, i32
  }
  func.func @transform_5(%arg0: i32) -> (i32, i32, i32) {
    %c0_i32 = arith.constant 0 : i32
    %c0_i32_0 = arith.constant 0 : i32
    %c0_i32_1 = arith.constant 0 : i32
    return %arg0, %c0_i32, %c0_i32_0 : i32, i32, i32
  }
}

</mosaic_0001>

<bundles_post_ra>
// kernel: bcnn_forward.3
= control target key start
LH: loop header
LB: loop body
LE: loop exit
PB: predicated region body
PF: predicated region fallthrough
CT: control target
= control target key end

     0   :  { %s378_s18 = smov 0   ;;  %s407_s0 = inlined_call_operand.vmem [shape: f32[2,8,256], index: 0, kind: input, shape index: {}, may-alias: {0,5}]   ;;  %s408_s1 = inlined_call_operand.vmem [shape: f32[8,1], index: 1, kind: input, shape index: {}]   ;;  %s409_s2 = inlined_call_operand.vmem [shape: f32[8,1], index: 2, kind: input, shape index: {}]   ;;  %s410_s3 = inlined_call_operand.vmem [shape: f32[8,1], index: 3, kind: input, shape index: {}]   ;;  %s411_s4 = inlined_call_operand.vmem [shape: f32[8,1], index: 4, kind: input, shape index: {}]   ;;  %s412_s5 = inlined_call_operand.vmem [shape: f32[2,8,256], index: 5, kind: output, shape index: {}, may-alias: {0,5}]  }
   0x1 LB: > { %s314_s19 = sadd.s32 4294967295, %s345_s18   ;;  %p318_p0 = scmp.ge.s32.totalorder %s345_s18, 1  ;;  %s345_s18 = sphi %s378_s18, %s15_s18  }
   0x2   : > { %p187_p1 = scmp.lt.s32.totalorder %s345_s18, 3 }
   0x4   : > { %p188_p2 = pnand %p318_p0, %p187_p1 }
   0x5   : > { %v225_v0 = vld [vmem:[%s408_s1] sm:$0xff] (!%p188_p2)  ;;  %v347_v2 = vmov (!%p188_p2), 0   ;;  %p215_p3 = scmp.lt.s32.totalorder (!%p188_p2), %s314_s19, 1 }
   0x6   : > { %191 = sbr.rel (%p188_p2) target bundleno = 166 (0xa6), region = 40  ;;  %v227_v1 = vld [vmem:[%s409_s2] sm:$0xff] (!%p188_p2)  ;;  %336 = vset.pattern.permute.xlu0 (!%p188_p2), %v347_v2  ;;  %v226_v3 = vmul.f32 (!%p188_p2), 0.0025510204, %v225_v0 }
   0x7   : > { %v228_v4 = vmul.f32 (!%p188_p2), 0.0025510204, %v227_v1  ;;  %v234_v9 = vld [vmem:[%s410_s3] sm:$0xff] (!%p188_p2) }
   0x8   : > { %v229_v5 = vmul.f32 (!%p188_p2), %v226_v3, %v226_v3  ;;  %v236_v12 = vld [vmem:[%s411_s4] sm:$0xff] (!%p188_p2) }
   0xa   : > { %v230_v6 = vsub.f32 (!%p188_p2), %v228_v4, %v229_v5 }
   0xc   : > { %v231_v7 = vmax.f32 (!%p188_p2), %v230_v6, 0.0 }
   0xd   : > { %s414_s19 = smov (!%p215_p3, %s314_s19), 1 }
   0xe   : > { %v232_v8 = vadd.f32 1e-05, %v231_v7  ;;  %s325_s28 = sshll.u32 %s414_s19, 4 }
   0xf   : > { %s219_s6 = scalar_lea.vmem %s407_s0, %s325_s28  ;;  %s224_s9 = scalar_lea.vmem %s412_s5, %s325_s28 }
  0x10   : > { %337 = vrsqrt.f32 %v232_v8  ;;  %v239_v16 = vld [vmem:[%s219_s6] sm:$0xff]  ;;  %v240_v17 = vld [vmem:[%s219_s6 + $0x8] sm:$0xff] }
  0x1a   : > { %v338_v10 = vpop.eup %337 }
  0x1b   : > { %v235_v11 = vmul.f32 %v338_v10, %v234_v9 }
  0x1d   : > { %243 = vperm.xlu0 %336, %v235_v11   ;;  %v237_v13 = vmul.f32 %v235_v11, %v226_v3 }
  0x1f   : > { %v238_v14 = vsub.f32 %v236_v12, %v237_v13 }
  0x21   : > { %250 = vperm.xlu0 %336, %v238_v14  }
  0x9c   : > { %v244_v15 = vpop.permute.xlu0 %243 }
  0x9d   : > { %v246_v18 = vmul.f32 %v244_v15, %v239_v16  ;;  %v247_v19 = vmul.f32 %v244_v15, %v240_v17 }
  0xa0   : > { %v251_v20 = vpop.permute.xlu0 %250 }
  0xa1   : > { %v253_v21 = vadd.f32 %v251_v20, %v246_v18  ;;  %v254_v22 = vadd.f32 %v251_v20, %v247_v19 }
  0xa3   : > { %v255_v23 = vmax.f32 %v253_v21, 0.0  ;;  %v256_v24 = vmax.f32 %v254_v22, 0.0 }
  0xa5   : > { %257 = vst [vmem:[%s224_s9] sm:$0xff] %v255_v23  ;;  %258 = vst [vmem:[%s224_s9 + $0x8] sm:$0xff] %v256_v24 }
  0xa6 PF: > { %s15_s18 = sadd.s32 1, %s345_s18  }
  0xa7   : > { %p12_p4 = scmp.ge.s32.totalorder %s15_s18, 4  }
  0xa9   :  { %14 = sbr.rel (!%p12_p4) target bundleno = 1 (0x1), region = 70 }

// kernel: bcnn_forward.2
= control target key start
LH: loop header
LB: loop body
LE: loop exit
PB: predicated region body
PF: predicated region fallthrough
CT: control target
= control target key end

     0   :  { %s1306_s18 = smov 0   ;;  %s1459_s0 = inlined_call_operand.vmem [shape: f32[2,4,384], index: 0, kind: input, shape index: {}]   ;;  %s1460_s1 = inlined_call_operand.vmem [shape: f32[9,8,4], index: 1, kind: input, shape index: {}]   ;;  %s1461_s2 = inlined_call_operand.vmem [shape: f32[1,256], index: 2, kind: input, shape index: {}]   ;;  %s1462_s3 = inlined_call_operand.vmem [shape: f32[2,8,256], index: 3, kind: output, shape index: {0}]   ;;  %s1463_s4 = inlined_call_operand.vmem [shape: f32[8,1], index: 4, kind: output, shape index: {1}]   ;;  %s1464_s5 = inlined_call_operand.vmem [shape: f32[8,1], index: 5, kind: output, shape index: {2}]  }
   0x1 LB: > { %s1312_s19 = sadd.s32 4294967295, %s1264_s18   ;;  %p1179_p0 = scmp.ge.s32.totalorder %s1264_s18, 1  ;;  %s1264_s18 = sphi %s1306_s18, %s16_s18  }
   0x2   : > { %p182_p1 = scmp.lt.s32.totalorder %s1264_s18, 3 }
   0x4   : > { %p183_p2 = pnand %p1179_p0, %p182_p1 }
   0x5   : > { %p210_p3 = scmp.lt.s32.totalorder (!%p183_p2), %s1312_s19, 1  ;;  %s1266_s25 = smov (!%p183_p2), 111   ;;  %v1267_v4 = vmov (!%p183_p2), 0.0   ;;  %vm235_vm0 = vcmask (!%p183_p2), 1039360   ;;  %vm242_vm1 = vcmask (!%p183_p2), 1043456   ;;  %vm603_vm2 = vcmask (!%p183_p2), 908288  }
   0x6   : > { %186 = sbr.rel (%p183_p2) target bundleno = 548 (0x224), region = 32  ;;  %677 = vmatprep.mubr.f32.mxu0 (!%p183_p2), %v1267_v4  ;;  %311 = vmatprep.mubr.f32.mxu1 (!%p183_p2), %v1267_v4  ;;  %s1268_s26 = smov (!%p183_p2), 127   ;;  %vm238_vm3 = vcmask (!%p183_p2), 31744   ;;  %v1198_v20 = vld [vmem:[%s1460_s1 + $0x20] sm:$0xff] (!%p183_p2)  ;;  %vm699_vm4 = vcmask (!%p183_p2), 900096   ;;  %v1183_v23 = vld [vmem:[%s1460_s1 + $0x8] sm:$0xff] (!%p183_p2)  ;;  %v1074_v60 = vlaneseq (!%p183_p2) }
   0x7   : > { %s1269_s27 = smov (!%p183_p2), 110   ;;  %s1270_s28 = smov (!%p183_p2), 96   ;;  %v1202_v29 = vld [vmem:[%s1460_s1 + $0x28] sm:$0xff] (!%p183_p2)  ;;  %vm795_vm5 = vcmask (!%p183_p2), 785408   ;;  %v221_v32 = vld [vmem:[%s1460_s1] sm:$0xff] (!%p183_p2)  ;;  %vm411_vm6 = vcmask (!%p183_p2), 1031168  }
   0x8   : > { %s1271_s29 = smov (!%p183_p2), 126   ;;  %s1272_s30 = smov (!%p183_p2), 95   ;;  %v1206_v38 = vld [vmem:[%s1460_s1 + $0x30] sm:$0xff] (!%p183_p2)  ;;  %vm891_vm7 = vcmask (!%p183_p2), 777216   ;;  %v1210_v47 = vld [vmem:[%s1460_s1 + $0x38] sm:$0xff] (!%p183_p2)  ;;  %vm507_vm8 = vcmask (!%p183_p2), 916480  }
   0x9   : > { %s1273_s6 = smov (!%p183_p2), 112   ;;  %s1274_s7 = smov (!%p183_p2), 94   ;;  %v1190_v44 = vld [vmem:[%s1460_s1 + $0x10] sm:$0xff] (!%p183_p2)  ;;  %vm987_vm9 = vcmask (!%p183_p2), 769024   ;;  %v1194_v56 = vld [vmem:[%s1460_s1 + $0x18] sm:$0xff] (!%p183_p2)  ;;  %v1214_v57 = vld [vmem:[%s1460_s1 + $0x40] sm:$0xff] (!%p183_p2) }
   0xa   : > { %v1075_v61 = vshrl.u32 (!%p183_p2), %v1074_v60, 7  ;;  %v1072_v63 = vld [vmem:[%s1461_s2] sm:$0x3] (!%p183_p2)  ;;  %p1218_p4 = scmp.ne.s32.totalorder (!%p183_p2), %s1312_s19, 0 }
   0xc   : > { %v1076_v62 = vsub.s32 (!%p183_p2), 0, %v1075_v61 }
   0xd   : > { %s1318_s20 = scalar_select %p210_p3, %s1312_s19, 1 }
   0xe   : > { %vm1090_vm10 = vcmask (!%p1218_p4), 7168  }
   0xf   : > { %s1238_s21 = smul.u32 12, %s1318_s20 }
  0x11   : > { %s1324_s24 = scalar_lea.vmem %s1459_s0, %s1238_s21 }
  0x12   : > { %v591_v0 = vld [vmem:[%s1324_s24 + $0x8] sm:$0xf]  ;;  %v1328_v1 = vld [vmem:[%s1324_s24] sm:$0xff] }
  0x13   : > { %601 = vrot.lane.b32.xlu0 %v591_v0, %s1266_s25  ;;  %597 = vrot.lane.b32.xlu1 %v1328_v1, %s1266_s25  ;;  %v1333_v2 = vcombine.high %v1328_v1, %v1328_v1  ;;  %v223_v3 = vld [vmem:[%s1324_s24 + $0x8] sm:$0xf]  ;;  %v1080_v0 = vsub.s32 1, %v1075_v61 }
  0x14   : > { %v687_v5 = vld [vmem:[%s1324_s24 + $0x8] sm:$0xf] }
  0x15   : > { %v783_v6 = vld [vmem:[%s1324_s24 + $0x8] sm:$0xf] }
  0x16   : > { %v399_v7 = vld [vmem:[%s1324_s24 + $0x8] sm:$0xf] }
  0x17   : > { %233 = vrot.lane.b32.xlu0 %v223_v3, %s1268_s26  ;;  %231 = vrot.lane.b32.xlu1 %v1333_v2, %s1268_s26  ;;  %v879_v8 = vld [vmem:[%s1324_s24 + $0x8] sm:$0xf] }
  0x18   : > { %v495_v9 = vld [vmem:[%s1324_s24 + $0x8] sm:$0xf] }
  0x19   : > { %v975_v10 = vld [vmem:[%s1324_s24 + $0x8] sm:$0xf] }
  0x1b   : > { %599 = vrot.lane.b32.xlu0 %v1333_v2, %s1266_s25  ;;  %695 = vrot.lane.b32.xlu1 %v1333_v2, %s1269_s27 }
  0x1f   : > { %697 = vrot.lane.b32.xlu0 %v687_v5, %s1269_s27  ;;  %229 = vrot.lane.b32.xlu1 %v1328_v1, %s1268_s26 }
  0x23   : > { %693 = vrot.lane.b32.xlu0 %v1328_v1, %s1269_s27  ;;  %791 = vrot.lane.b32.xlu1 %v1333_v2, %s1270_s28 }
  0x27   : > { %793 = vrot.lane.b32.xlu0 %v783_v6, %s1270_s28  ;;  %789 = vrot.lane.b32.xlu1 %v1328_v1, %s1270_s28 }
  0x2b   : > { %407 = vrot.lane.b32.xlu0 %v1333_v2, %s1271_s29  ;;  %409 = vrot.lane.b32.xlu1 %v399_v7, %s1271_s29 }
  0x2f   : > { %887 = vrot.lane.b32.xlu0 %v1333_v2, %s1272_s30  ;;  %889 = vrot.lane.b32.xlu1 %v879_v8, %s1272_s30 }
  0x33   : > { %405 = vrot.lane.b32.xlu0 %v1328_v1, %s1271_s29  ;;  %885 = vrot.lane.b32.xlu1 %v1328_v1, %s1272_s30 }
  0x37   : > { %503 = vrot.lane.b32.xlu0 %v1333_v2, %s1273_s6  ;;  %505 = vrot.lane.b32.xlu1 %v495_v9, %s1273_s6 }
  0x3b   : > { %983 = vrot.lane.b32.xlu0 %v1333_v2, %s1274_s7  ;;  %985 = vrot.lane.b32.xlu1 %v975_v10, %s1274_s7 }
  0x3f   : > { %501 = vrot.lane.b32.xlu0 %v1328_v1, %s1273_s6  ;;  %981 = vrot.lane.b32.xlu1 %v1328_v1, %s1274_s7  ;;  %s1221_s6 = sshll.u32 %s1318_s20, 4 }
  0x40   : > { %s219_s9 = scalar_lea.vmem %s1462_s3, %s1221_s6 }
  0x85   : > { %v602_v11 = vpop.permute.xlu0 %601  ;;  %v598_v12 = vpop.permute.xlu1 %597 }
  0x89   : > { %v234_v13 = vpop.permute.xlu0 %233  ;;  %v232_v14 = vpop.permute.xlu1 %231 }
  0x8a   : > { %v237_v15 = vsel %vm235_vm0, %v232_v14, %v234_v13 }
  0x8b   : > { %1184 = vmatprep.subr.msk.mxu1 %vm242_vm1, %v237_v15 }
  0x8d   : > { %v600_v16 = vpop.permute.xlu0 %599  ;;  %v696_v17 = vpop.permute.xlu1 %695 }
  0x8e   : > { %v605_v18 = vsel %vm603_vm2, %v600_v16, %v602_v11  ;;  %v604_v19 = vsel %vm603_vm2, %v598_v12, %v600_v16  ;;  %v1275_v11 = vmov (!%p1218_p4), 0.0  }
  0x8f   : > { %1199 = vmatprep.subr.msk.mxu0 %vm242_vm1, %v605_v18  ;;  %1091 = vst.msk [vmem:[%s1463_s4] sm:$0xff] (!%p1218_p4), %vm1090_vm10, %v1275_v11  ;;  %1092 = vst.msk [vmem:[%s1464_s5] sm:$0xff] (!%p1218_p4), %vm1090_vm10, %v1275_v11 }
  0x90   : > { %1200 = vmatpush1.msk.msra.mxu0 %vm242_vm1, %v604_v19 }
  0x91   : > { %v698_v21 = vpop.permute.xlu0 %697  ;;  %v230_v22 = vpop.permute.xlu1 %229  ;;  %1201 = vmatmul.mubr.msk.f32.vlgmr.msra.gmra.mrb[0].mxu0 %vm238_vm3, %v1198_v20 }
  0x92   : > { %v701_v24 = vsel %vm699_vm4, %v696_v17, %v698_v21  ;;  %v236_v25 = vsel %vm235_vm0, %v230_v22, %v232_v14  ;;  %773 = vmatprep.mubr.f32.mxu0 %v1267_v4 }
  0x93   : > { %1185 = vmatpush1.msk.msra.mxu1 %vm242_vm1, %v236_v25  ;;  %1203 = vmatprep.subr.msk.mxu0 %vm242_vm1, %v701_v24 }
  0x94   : > { %1186 = vmatmul.mubr.msk.f32.vlgmr.msra.gmra.mrb[0].mxu1 %vm238_vm3, %v1183_v23  ;;  %1187 = vmatprep.subr.msk.mxu1 %vm242_vm1, %v1333_v2 }
  0x95   : > { %v694_v26 = vpop.permute.xlu0 %693  ;;  %v792_v27 = vpop.permute.xlu1 %791  ;;  %1188 = vmatpush1.msk.msra.mxu1 %vm242_vm1, %v1328_v1  ;;  %391 = vmatprep.mubr.f32.mxu1 %v1267_v4  ;;  %v1077_v1 = vrot.slane %v1072_v63, %v1076_v62 }
  0x96   : > { %v700_v28 = vsel %vm699_vm4, %v694_v26, %v696_v17 }
  0x97   : > { %1204 = vmatpush1.msk.msra.mxu0 %vm242_vm1, %v700_v28 }
  0x99   : > { %v794_v30 = vpop.permute.xlu0 %793  ;;  %v790_v31 = vpop.permute.xlu1 %789  ;;  %1205 = vmatmul.mubr.msk.f32.vlgmr.msra.gmra.mrb[0].mxu0 %vm238_vm3, %v1202_v29 }
  0x9a   : > { %v797_v33 = vsel %vm795_vm5, %v792_v27, %v794_v30  ;;  %v796_v34 = vsel %vm795_vm5, %v790_v31, %v792_v27  ;;  %869 = vmatprep.mubr.f32.mxu0 %v1267_v4 }
  0x9b   : > { %1207 = vmatprep.subr.msk.mxu0 %vm242_vm1, %v797_v33 }
  0x9c   : > { %1208 = vmatpush1.msk.msra.mxu0 %vm242_vm1, %v796_v34  ;;  %1189 = vmatmul.mubr.msk.f32.vlgmr.msra.gmra.mrb[0].mxu1 %vm238_vm3, %v221_v32 }
  0x9d   : > { %v408_v35 = vpop.permute.xlu0 %407  ;;  %v410_v36 = vpop.permute.xlu1 %409  ;;  %485 = vmatprep.mubr.f32.mxu1 %v1267_v4 }
  0x9e   : > { %v413_v37 = vsel %vm411_vm6, %v408_v35, %v410_v36 }
  0x9f   : > { %1191 = vmatprep.subr.msk.mxu1 %vm242_vm1, %v413_v37 }
  0xa1   : > { %v888_v39 = vpop.permute.xlu0 %887  ;;  %v890_v40 = vpop.permute.xlu1 %889  ;;  %1209 = vmatmul.mubr.msk.f32.vlgmr.msra.gmra.mrb[0].mxu0 %vm238_vm3, %v1206_v38 }
  0xa2   : > { %v893_v41 = vsel %vm891_vm7, %v888_v39, %v890_v40  ;;  %965 = vmatprep.mubr.f32.mxu0 %v1267_v4 }
  0xa3   : > { %1211 = vmatprep.subr.msk.mxu0 %vm242_vm1, %v893_v41 }
  0xa5   : > { %v406_v42 = vpop.permute.xlu0 %405  ;;  %v886_v43 = vpop.permute.xlu1 %885 }
  0xa6   : > { %v412_v45 = vsel %vm411_vm6, %v406_v42, %v408_v35  ;;  %v892_v46 = vsel %vm891_vm7, %v886_v43, %v888_v39 }
  0xa7   : > { %1192 = vmatpush1.msk.msra.mxu1 %vm242_vm1, %v412_v45  ;;  %1212 = vmatpush1.msk.msra.mxu0 %vm242_vm1, %v892_v46 }
  0xa8   : > { %1193 = vmatmul.mubr.msk.f32.vlgmr.msra.gmra.mrb[0].mxu1 %vm238_vm3, %v1190_v44 }
  0xa9   : > { %v504_v48 = vpop.permute.xlu0 %503  ;;  %v506_v49 = vpop.permute.xlu1 %505  ;;  %1213 = vmatmul.mubr.msk.f32.vlgmr.msra.gmra.mrb[0].mxu0 %vm238_vm3, %v1210_v47  ;;  %581 = vmatprep.mubr.f32.mxu1 %v1267_v4 }
  0xaa   : > { %v509_v50 = vsel %vm507_vm8, %v504_v48, %v506_v49  ;;  %1061 = vmatprep.mubr.f32.mxu0 %v1267_v4  ;;  %v1081_v4 = vrot.slane %v1072_v63, %v1080_v0 }
  0xab   : > { %1195 = vmatprep.subr.msk.mxu1 %vm242_vm1, %v509_v50 }
  0xad   : > { %v984_v51 = vpop.permute.xlu0 %983  ;;  %v986_v52 = vpop.permute.xlu1 %985 }
  0xae   : > { %v989_v53 = vsel %vm987_vm9, %v984_v51, %v986_v52 }
  0xaf   : > { %1215 = vmatprep.subr.msk.mxu0 %vm242_vm1, %v989_v53 }
  0xb1   : > { %v502_v54 = vpop.permute.xlu0 %501  ;;  %v982_v55 = vpop.permute.xlu1 %981 }
  0xb2   : > { %v508_v58 = vsel %vm507_vm8, %v502_v54, %v504_v48  ;;  %v988_v59 = vsel %vm987_vm9, %v982_v55, %v984_v51 }
  0xb3   : > { %1196 = vmatpush1.msk.msra.mxu1 %vm242_vm1, %v508_v58  ;;  %1216 = vmatpush1.msk.msra.mxu0 %vm242_vm1, %v988_v59 }
  0xb4   : > { %1197 = vmatmul.mubr.msk.f32.vlgmr.msra.gmra.mrb[0].mxu1 %vm238_vm3, %v1194_v56  ;;  %1217 = vmatmul.mubr.msk.f32.vlgmr.msra.gmra.mrb[0].mxu0 %vm238_vm3, %v1214_v57 }
 0x185   : > { %1089 = sbr.rel (%p1218_p4) target bundleno = 396 (0x18c), region = 36 }
 0x187   : > { %v583_v2 = vpop.f32.mrb[0].mxu1  ;;  %v1063_v3 = vpop.f32.mrb[0].mxu0 }
 0x188   : > { %v1222_v5 = vadd.f32 %v1063_v3, %v583_v2  ;;  %v585_v6 = vpop.f32.mrb[1].mxu1  ;;  %v1065_v7 = vpop.f32.mrb[1].mxu0 }
 0x189   : > { %v1223_v8 = vadd.f32 %v1065_v7, %v585_v6 }
 0x18a   : > { %1070 = vst [vmem:[%s219_s9] sm:$0xff] %v1222_v5  ;;  %v1084_v9 = vmul.f32 %v1222_v5, %v1077_v1 }
 0x18b   : > { %1071 = vst [vmem:[%s219_s9 + $0x8] sm:$0xff] %v1223_v8  ;;  %v1085_v10 = vmul.f32 %v1223_v8, %v1081_v4 }
 0x18c PF: > { %v1101_v13 = vmul.f32 %v1222_v5, %v1084_v9  ;;  %v1093_v16 = vld [vmem:[%s1463_s4] sm:$0xff]  ;;  %vm1098_vm11 = vcmask 7168  }
 0x18d   : > { %v1094_v12 = vadd.f32 %v1085_v10, %v1084_v9  ;;  %v1102_v14 = vmul.f32 %v1223_v8, %v1085_v10  ;;  %v1100_v19 = vld [vmem:[%s1464_s5] sm:$0xff] }
 0x18f   : > { %1095 = vadd.xlane.f32.xlu0 %v1094_v12  ;;  %v1103_v15 = vadd.f32 %v1102_v14, %v1101_v13 }
 0x193   : > { %1104 = vadd.xlane.f32.xlu0 %v1103_v15 }
 0x21c   : > { %v1096_v17 = vpop.xlane.xlu0 %1095 }
 0x21d   : > { %v1097_v18 = vadd.f32 %v1096_v17, %v1093_v16 }
 0x21f   : > { %1099 = vst.msk [vmem:[%s1463_s4] sm:$0xff] %vm1098_vm11, %v1097_v18 }
 0x220   : > { %v1105_v20 = vpop.xlane.xlu0 %1104 }
 0x221   : > { %v1106_v21 = vadd.f32 %v1105_v20, %v1100_v19 }
 0x223   : > { %1107 = vst.msk [vmem:[%s1464_s5] sm:$0xff] %vm1098_vm11, %v1106_v21 }
 0x224 PF: > { %s16_s18 = sadd.s32 1, %s1264_s18  }
 0x225   : > { %p13_p5 = scmp.ge.s32.totalorder %s16_s18, 4  }
 0x227   :  { %15 = sbr.rel (!%p13_p5) target bundleno = 1 (0x1), region = 90 }

</bundles_post_ra>
